<compile_context>
chip_gen: v5e
topology: v5e:2x2
jax: 0.10.0
libtpu: 0.0.40
codegen_flags: <defaults>
</compile_context>

<pallas_src>
import math
import jax
import jax.numpy as jnp
from jax.experimental import pallas as pl
from jax.experimental.pallas import tpu as pltpu


def _round_up(n, m):
    return ((n + m - 1) // m) * m


def _mlp_kernel(x_ref, w1_ref, b1_ref, w2_ref, b2_ref, w3_ref, b3_ref, y_ref):
    # Fused forward on one batch tile: y = (tanh(tanh(x@W1+b1)@W2+b2))@W3 + b3
    # Dots accumulate in f32 on the MXU; tanh/bias adds run in f32 on the VPU/EUP.
    x = x_ref[...]
    h1 = jnp.tanh(
        jnp.dot(x, w1_ref[...], preferred_element_type=jnp.float32) + b1_ref[...]
    )
    h2 = jnp.tanh(
        jnp.dot(h1.astype(w2_ref.dtype), w2_ref[...],
                preferred_element_type=jnp.float32) + b2_ref[...]
    )
    y = (
        jnp.dot(h2.astype(w3_ref.dtype), w3_ref[...],
                preferred_element_type=jnp.float32) + b3_ref[...]
    )
    y_ref[...] = y.astype(y_ref.dtype)


def output_net_2_forward(x, params, *, block_b=512, use_bf16=False):
    """x: [B, input_size] float32. params: dict of W1,b1,W2,b2,W3,b3 ([in,out] weights).

    block_b: max rows per grid step (multiple of 8; large tiles keep the MXU pipeline full
             since K/N are tiny). use_bf16: cast x and W1/W2/W3 to bf16 for the MXU
             (halves x DMA traffic, doubles MXU rate on v6e/v7x); accumulation stays f32.
    """
    w1, b1 = params["W1"], params["b1"]
    w2, b2 = params["W2"], params["b2"]
    w3, b3 = params["W3"], params["b3"]

    B, in_dim = x.shape
    h1_dim = w1.shape[1]
    h2_dim = w2.shape[1]
    out_dim = w3.shape[1]

    # Batch tile: multiple of 8 (sublane), capped by block_b; pad B up to a whole tile.
    tile_b = min(_round_up(block_b, 8), _round_up(B, 8))
    b_pad = _round_up(B, tile_b)
    if b_pad != B:
        x = jnp.pad(x, ((0, b_pad - B), (0, 0)))

    if use_bf16:
        x = x.astype(jnp.bfloat16)
        w1 = w1.astype(jnp.bfloat16)
        w2 = w2.astype(jnp.bfloat16)
        w3 = w3.astype(jnp.bfloat16)
        # biases stay f32: they are added after the f32 accumulation.

    grid = (b_pad // tile_b,)

    # Weights/biases: full-array blocks, same block index every grid step -> VMEM-resident.
    def resident(arr):
        return pl.BlockSpec(arr.shape, lambda b: (0, 0))

    itemsize = lambda a: a.size * a.dtype.itemsize
    cost = pl.CostEstimate(
        flops=2 * b_pad * (in_dim * h1_dim + h1_dim * h2_dim + h2_dim * out_dim),
        transcendentals=b_pad * (h1_dim + h2_dim),
        bytes_accessed=(
            itemsize(x)
            + b_pad * out_dim * 4
            + sum(itemsize(a) for a in (w1, b1, w2, b2, w3, b3))
        ),
    )

    y = pl.pallas_call(
        _mlp_kernel,
        out_shape=jax.ShapeDtypeStruct((b_pad, out_dim), jnp.float32),
        grid=grid,
        in_specs=[
            pl.BlockSpec((tile_b, in_dim), lambda b: (b, 0)),  # streamed batch tile
            resident(w1), resident(b1),
            resident(w2), resident(b2),
            resident(w3), resident(b3),
        ],
        out_specs=pl.BlockSpec((tile_b, out_dim), lambda b: (b, 0)),
        compiler_params=pltpu.CompilerParams(
            dimension_semantics=("parallel",),  # batch axis -> 2 TCs on v7x, harmless elsewhere
        ),
        cost_estimate=cost,
    )(x, w1, b1, w2, b2, w3, b3)

    return y[:B] if b_pad != B else y


def init_params(key, input_size, hidden_dim, out_class_1):
    """Deterministic init mimicking PyTorch nn.Linear default:
    uniform(-1/sqrt(fan_in), 1/sqrt(fan_in)). Weights stored as [in, out]."""
    dims = [
        (input_size, 2 * hidden_dim),   # input2hidden
        (2 * hidden_dim, hidden_dim),   # hidden2hidden
        (hidden_dim, out_class_1),      # hidden2label
    ]
    params = {}
    for i, (fan_in, fan_out) in enumerate(dims, start=1):
        key, kw, kb = jax.random.split(key, 3)
        bound = 1.0 / math.sqrt(fan_in)
        params[f"W{i}"] = jax.random.uniform(
            kw, (fan_in, fan_out), jnp.float32, -bound, bound
        )
        # biases kept 2D [1, fan_out] for TPU-friendly layout; broadcasts over batch
        params[f"b{i}"] = jax.random.uniform(
            kb, (1, fan_out), jnp.float32, -bound, bound
        )
    return params


def reference_forward(x, params):
    h1 = jnp.tanh(x @ params["W1"] + params["b1"])
    h2 = jnp.tanh(h1 @ params["W2"] + params["b2"])
    return h2 @ params["W3"] + params["b3"]


if __name__ == "__main__":
    # Small shapes consistent with the module:
    #   input_size = 32, args.hidden_layer = 16, args.out_class_1 = 4
    input_size, hidden_dim, out_class_1 = 32, 16, 4

    key = jax.random.PRNGKey(0)
    key, kx1, kx2 = jax.random.split(key, 3)
    params = init_params(key, input_size, hidden_dim, out_class_1)

    # Case 1: toy batch (B=8), f32 path, single grid step.
    x_small = jax.random.normal(kx1, (8, input_size), jnp.float32)
    y_small = jax.block_until_ready(output_net_2_forward(x_small, params))
    y_small_ref = reference_forward(x_small, params)
    assert y_small.shape == (8, out_class_1)
    assert jnp.allclose(y_small, y_small_ref, atol=1e-5, rtol=1e-5), "f32 small mismatch"

    # Case 2: larger, non-multiple-of-8 batch -> exercises padding + multi-step parallel grid.
    x_big = jax.random.normal(kx2, (300, input_size), jnp.float32)
    y_big = jax.block_until_ready(output_net_2_forward(x_big, params, block_b=128))
    y_big_ref = reference_forward(x_big, params)
    assert y_big.shape == (300, out_class_1)
    assert jnp.allclose(y_big, y_big_ref, atol=1e-5, rtol=1e-5), "f32 big mismatch"

    # Case 3: bf16 MXU operands (v6e/v7x fast path), f32 accumulation; loose tolerance.
    y_bf16 = jax.block_until_ready(
        output_net_2_forward(x_big, params, block_b=128, use_bf16=True)
    )
    assert jnp.allclose(y_bf16, y_big_ref, atol=5e-2, rtol=5e-2), "bf16 mismatch"

    print("KERNEL_OK")
</pallas_src>

<mosaic_0001>
module attributes {stable_mosaic.version = 11 : i64} {
  func.func @_mlp_kernel(%arg0: i32, %arg1: memref<8x32xf32, #tpu.memory_space<vmem>>, %arg2: memref<32x32xf32, #tpu.memory_space<vmem>>, %arg3: memref<1x32xf32, #tpu.memory_space<vmem>>, %arg4: memref<32x16xf32, #tpu.memory_space<vmem>>, %arg5: memref<1x16xf32, #tpu.memory_space<vmem>>, %arg6: memref<16x4xf32, #tpu.memory_space<vmem>>, %arg7: memref<1x4xf32, #tpu.memory_space<vmem>>, %arg8: memref<8x4xf32, #tpu.memory_space<vmem>>) attributes {dimension_semantics = [#tpu.dimension_semantics<parallel>], iteration_bounds = array<i64: 1>, scalar_prefetch = 0 : i64, scratch_operands = 0 : i64, tpu.core_type = #tpu.core_type<tc>, window_params = [{transform_indices = @transform_0, window_bounds = array<i64: 8, 32>}, {pipeline_mode = #tpu.pipeline_mode<synchronous>, transform_indices = @transform_1, window_bounds = array<i64: 32, 32>}, {pipeline_mode = #tpu.pipeline_mode<synchronous>, transform_indices = @transform_2, window_bounds = array<i64: 1, 32>}, {pipeline_mode = #tpu.pipeline_mode<synchronous>, transform_indices = @transform_3, window_bounds = array<i64: 32, 16>}, {pipeline_mode = #tpu.pipeline_mode<synchronous>, transform_indices = @transform_4, window_bounds = array<i64: 1, 16>}, {pipeline_mode = #tpu.pipeline_mode<synchronous>, transform_indices = @transform_5, window_bounds = array<i64: 16, 4>}, {pipeline_mode = #tpu.pipeline_mode<synchronous>, transform_indices = @transform_6, window_bounds = array<i64: 1, 4>}, {transform_indices = @transform_7, window_bounds = array<i64: 8, 4>}]} {
    %c0 = arith.constant 0 : index
    %c0_0 = arith.constant 0 : index
    %0 = vector.load %arg1[%c0, %c0_0] : memref<8x32xf32, #tpu.memory_space<vmem>>, vector<8x32xf32>
    %c0_1 = arith.constant 0 : index
    %c0_2 = arith.constant 0 : index
    %1 = vector.load %arg2[%c0_1, %c0_2] : memref<32x32xf32, #tpu.memory_space<vmem>>, vector<32x32xf32>
    %cst = arith.constant dense<0.000000e+00> : vector<8x32xf32>
    %2 = tpu.matmul %0, %1, %cst {dimension_numbers = #tpu.dot_dimension_numbers<[1], [0], [0], [1], [0, 0, 1, 1], [], []>} : vector<8x32xf32>, vector<32x32xf32>, vector<8x32xf32> -> vector<8x32xf32>
    %c0_3 = arith.constant 0 : index
    %c0_4 = arith.constant 0 : index
    %3 = vector.load %arg3[%c0_3, %c0_4] : memref<1x32xf32, #tpu.memory_space<vmem>>, vector<1x32xf32>
    %4 = vector.broadcast %3 : vector<1x32xf32> to vector<8x32xf32>
    %5 = arith.addf %2, %4 : vector<8x32xf32>
    %6 = math.tanh %5 : vector<8x32xf32>
    %c0_5 = arith.constant 0 : index
    %c0_6 = arith.constant 0 : index
    %7 = vector.load %arg4[%c0_5, %c0_6] : memref<32x16xf32, #tpu.memory_space<vmem>>, vector<32x16xf32>
    %cst_7 = arith.constant dense<0.000000e+00> : vector<8x16xf32>
    %8 = tpu.matmul %6, %7, %cst_7 {dimension_numbers = #tpu.dot_dimension_numbers<[1], [0], [0], [1], [0, 0, 1, 1], [], []>} : vector<8x32xf32>, vector<32x16xf32>, vector<8x16xf32> -> vector<8x16xf32>
    %c0_8 = arith.constant 0 : index
    %c0_9 = arith.constant 0 : index
    %9 = vector.load %arg5[%c0_8, %c0_9] : memref<1x16xf32, #tpu.memory_space<vmem>>, vector<1x16xf32>
    %10 = vector.broadcast %9 : vector<1x16xf32> to vector<8x16xf32>
    %11 = arith.addf %8, %10 : vector<8x16xf32>
    %12 = math.tanh %11 : vector<8x16xf32>
    %c0_10 = arith.constant 0 : index
    %c0_11 = arith.constant 0 : index
    %13 = vector.load %arg6[%c0_10, %c0_11] : memref<16x4xf32, #tpu.memory_space<vmem>>, vector<16x4xf32>
    %cst_12 = arith.constant dense<0.000000e+00> : vector<8x4xf32>
    %14 = tpu.matmul %12, %13, %cst_12 {dimension_numbers = #tpu.dot_dimension_numbers<[1], [0], [0], [1], [0, 0, 1, 1], [], []>} : vector<8x16xf32>, vector<16x4xf32>, vector<8x4xf32> -> vector<8x4xf32>
    %c0_13 = arith.constant 0 : index
    %c0_14 = arith.constant 0 : index
    %15 = vector.load %arg7[%c0_13, %c0_14] : memref<1x4xf32, #tpu.memory_space<vmem>>, vector<1x4xf32>
    %16 = vector.broadcast %15 : vector<1x4xf32> to vector<8x4xf32>
    %17 = arith.addf %14, %16 : vector<8x4xf32>
    %c0_15 = arith.constant 0 : index
    %c0_16 = arith.constant 0 : index
    %18 = vector.load %arg8[%c0_15, %c0_16] : memref<8x4xf32, #tpu.memory_space<vmem>>, vector<8x4xf32>
    tpu.vector_store %arg8[%c0_15, %c0_16], %17 {strides = array<i32>} : memref<8x4xf32, #tpu.memory_space<vmem>>, vector<8x4xf32>,
    return
  }
  func.func @transform_0(%arg0: i32) -> (i32, i32) {
    %c0_i32 = arith.constant 0 : i32
    %c0_i32_0 = arith.constant 0 : i32
    return %arg0, %c0_i32 : i32, i32
  }
  func.func @transform_1(%arg0: i32) -> (i32, i32) {
    %c0_i32 = arith.constant 0 : i32
    %c0_i32_0 = arith.constant 0 : i32
    %c0_i32_1 = arith.constant 0 : i32
    return %c0_i32, %c0_i32_0 : i32, i32
  }
  func.func @transform_2(%arg0: i32) -> (i32, i32) {
    %c0_i32 = arith.constant 0 : i32
    %c0_i32_0 = arith.constant 0 : i32
    %c0_i32_1 = arith.constant 0 : i32
    return %c0_i32, %c0_i32_0 : i32, i32
  }
  func.func @transform_3(%arg0: i32) -> (i32, i32) {
    %c0_i32 = arith.constant 0 : i32
    %c0_i32_0 = arith.constant 0 : i32
    %c0_i32_1 = arith.constant 0 : i32
    return %c0_i32, %c0_i32_0 : i32, i32
  }
  func.func @transform_4(%arg0: i32) -> (i32, i32) {
    %c0_i32 = arith.constant 0 : i32
    %c0_i32_0 = arith.constant 0 : i32
    %c0_i32_1 = arith.constant 0 : i32
    return %c0_i32, %c0_i32_0 : i32, i32
  }
  func.func @transform_5(%arg0: i32) -> (i32, i32) {
    %c0_i32 = arith.constant 0 : i32
    %c0_i32_0 = arith.constant 0 : i32
    %c0_i32_1 = arith.constant 0 : i32
    return %c0_i32, %c0_i32_0 : i32, i32
  }
  func.func @transform_6(%arg0: i32) -> (i32, i32) {
    %c0_i32 = arith.constant 0 : i32
    %c0_i32_0 = arith.constant 0 : i32
    %c0_i32_1 = arith.constant 0 : i32
    return %c0_i32, %c0_i32_0 : i32, i32
  }
  func.func @transform_7(%arg0: i32) -> (i32, i32) {
    %c0_i32 = arith.constant 0 : i32
    %c0_i32_0 = arith.constant 0 : i32
    return %arg0, %c0_i32 : i32, i32
  }
}

</mosaic_0001>

<bundles_post_ra>
// kernel: tpu_custom_call.1
= control target key start
LH: loop header
LB: loop body
LE: loop exit
PB: predicated region body
PF: predicated region fallthrough
CT: control target
= control target key end

     0   :  { %vm35_vm0 = vcmask 261120   ;;  %vm98_vm1 = vcmask 130048   ;;  %vm122_vm2 = vcmask 31744   ;;  %s225_s1 = inlined_call_operand.vmem [shape: f32[32,32], index: 1, kind: input, shape index: {}]   ;;  %s226_s2 = inlined_call_operand.vmem [shape: f32[1,32], index: 2, kind: input, shape index: {}]   ;;  %s227_s0 = inlined_call_operand.vmem [shape: f32[8,32], index: 0, kind: input, shape index: {}]   ;;  %s228_s4 = inlined_call_operand.vmem [shape: f32[1,16], index: 4, kind: input, shape index: {}]   ;;  %s229_s3 = inlined_call_operand.vmem [shape: f32[32,16], index: 3, kind: input, shape index: {}]   ;;  %s230_s6 = inlined_call_operand.vmem [shape: f32[1,4], index: 6, kind: input, shape index: {}]   ;;  %s231_s5 = inlined_call_operand.vmem [shape: f32[16,4], index: 5, kind: input, shape index: {}]   ;;  %s232_s7 = inlined_call_operand.vmem [shape: f32[8,4], index: 7, kind: output, shape index: {}]  }
   0x1   :  { %v30_v0 = vld [vmem:[%s225_s1 + $0x18] sm:$0xff]  ;;  %v29_v1 = vld [vmem:[%s225_s1 + $0x10] sm:$0xff]  ;;  %v28_v2 = vld [vmem:[%s225_s1 + $0x8] sm:$0xff] }
   0x2   :  { %51 = vmatpush.msra.mxu0 %v30_v0  ;;  %v27_v3 = vld [vmem:[%s225_s1] sm:$0xff]  ;;  %v63_v5 = vld [vmem:[%s229_s3 + $0x18] sm:$0xff]  ;;  %v62_v6 = vld [vmem:[%s229_s3 + $0x10] sm:$0xff] }
   0x3   :  { %v26_v4 = vld [vmem:[%s227_s0] sm:$0xff]  ;;  %83 = vmatpush.msra.mxu1 %v63_v5  ;;  %v61_v7 = vld [vmem:[%s229_s3 + $0x8] sm:$0xff] }
   0x4   :  { %52 = vmatpush.msra.mxu0 %v29_v1  ;;  %v60_v8 = vld [vmem:[%s229_s3] sm:$0xff]  ;;  %v93_v13 = vld [vmem:[%s231_s5 + $0x8] sm:$0xff] }
   0x5   :  { %84 = vmatpush.msra.mxu1 %v62_v6  ;;  %v131_v9 = vld [vmem:[%s226_s2] ss:$0 sm:$0xff]  ;;  %116 = vmatpush.msra.mxu2 %v93_v13 }
   0x6   :  { %53 = vmatpush.msra.mxu0 %v28_v2  ;;  %v92_v14 = vld [vmem:[%s231_s5] sm:$0xff] }
   0x7   :  { %85 = vmatpush.msra.mxu1 %v61_v7  ;;  %117 = vmatpush.msra.mxu2 %v92_v14  ;;  %v132_v15 = vld [vmem:[%s228_s4] ss:$0 sm:$0xff] }
   0x8   :  { %54 = vmatpush.msra.mxu0 %v27_v3  ;;  %v133_v19 = vld [vmem:[%s230_s6] ss:$0 sm:$0xff] }
   0x9   :  { %128 = vmatmul.msk.f32.vlgmr.msra.gmra.mxu0 %vm35_vm0, %v26_v4  ;;  %86 = vmatpush.msra.mxu1 %v60_v8 }
  0x86   :  { %v56_v10 = vpop.f32.mrf.mxu0 }
  0x87   :  { %v57_v11 = vadd.f32 %v131_v9, %v56_v10 }
  0x89   :  { %134 = vtanh.f32 %v57_v11 }
  0x8f   :  { %v135_v12 = vpop.eup %134 }
  0x90   :  { %129 = vmatmul.msk.f32.vlgmr.msra.gmra.mxu1 %vm35_vm0, %v135_v12 }
 0x10d   :  { %v88_v16 = vpop.f32.mrf.mxu1 }
 0x10e   :  { %v89_v17 = vadd.f32 %v132_v15, %v88_v16 }
 0x110   :  { %136 = vtanh.f32 %v89_v17 }
 0x116   :  { %v137_v18 = vpop.eup %136 }
 0x117   :  { %130 = vmatmul.msk.f32.vlgmr.msra.gmra.mxu2 %vm98_vm1, %v137_v18 }
 0x19a   :  { %v119_v20 = vpop.f32.mrf.mxu2 }
 0x19b   :  { %v120_v21 = vadd.f32 %v133_v19, %v119_v20 }
 0x19d   :  { %123 = vst.msk [vmem:[%s232_s7] sm:$0xff] %vm122_vm2, %v120_v21 }

</bundles_post_ra>
